<compile_context>
chip_gen: v5e
topology: v5e:2x2
jax: 0.10.0
libtpu: 0.0.40
codegen_flags: <defaults>
</compile_context>

<pallas_src>
import jax
import jax.numpy as jnp
from jax.experimental import pallas as pl
from jax.experimental.pallas import tpu as pltpu

_LANE = 128
_SUBLANE = 8
_MAX_BLOCK_B = 256   # batch rows per grid step once the batch is large


def _round_up(x, m):
    return (x + m - 1) // m * m


def _vae_kernel(x_ref, eps_ref,
                w1_ref, b1_ref,
                wmulv_ref, bmulv_ref,
                wd1_ref, bd1_ref,
                wd2_ref, bd2_ref,
                recon_ref, mulv_ref):
    zp = eps_ref.shape[-1]                      # padded latent width (static)

    # ---- encoder hidden: bf16 MXU inputs, f32 accumulation, f32 elementwise ----
    x = x_ref[...]
    h = jnp.dot(x.astype(jnp.bfloat16), w1_ref[...],
                preferred_element_type=jnp.float32) + b1_ref[...]
    h = jnp.maximum(h, 0.0)                     # ReLU (f32, VPU)

    # ---- fused mu | log_var projection -> single lane-dense (bm, 2*zp) store ----
    mulv = jnp.dot(h.astype(jnp.bfloat16), wmulv_ref[...],
                   preferred_element_type=jnp.float32) + bmulv_ref[...]
    mulv_ref[...] = mulv                        # packed output, split in wrapper

    mu = mulv[:, :zp]
    lv = mulv[:, zp:]

    # ---- reparameterise: z = mu + eps * exp(0.5 * log_var) (all f32) ----
    z = mu + eps_ref[...] * jnp.exp(0.5 * lv)

    # ---- decoder ----
    hd = jnp.dot(z.astype(jnp.bfloat16), wd1_ref[...],
                 preferred_element_type=jnp.float32) + bd1_ref[...]
    hd = jnp.maximum(hd, 0.0)                   # ReLU
    logits = jnp.dot(hd.astype(jnp.bfloat16), wd2_ref[...],
                     preferred_element_type=jnp.float32) + bd2_ref[...]
    recon_ref[...] = jax.nn.sigmoid(logits)


@jax.jit
def vae_forward(x_nchw, eps, kparams):
    """Fused VAE forward pass.

    Args:
      x_nchw:  (B, C, H, W) float32 input.
      eps:     (B, Z) float32 standard-normal noise (torch.randn_like(std)).
      kparams: dict from `prepare_kernel_params` (fused/padded bf16 weights,
               f32 biases).

    Returns:
      (recon_nchw, mu, log_var) matching the PyTorch module's outputs.
    """
    B, C, H, W = x_nchw.shape
    D = C * H * W
    x_flat = x_nchw.reshape(B, D).astype(jnp.float32)

    Z = eps.shape[1]                            # real latent width
    Zp = kparams["w_mulv"].shape[1] // 2        # padded latent width

    # Batch padding / tiling: whole vregs (multiple of 8 sublanes); a batch grid
    # only kicks in for large B (demo shapes -> single grid step).
    bm = min(_round_up(B, _SUBLANE), _MAX_BLOCK_B)
    B_pad = _round_up(B, bm)
    grid = (B_pad // bm,)

    if B_pad != B:
        x_flat = jnp.pad(x_flat, ((0, B_pad - B), (0, 0)))
    eps_p = jnp.zeros((B_pad, Zp), jnp.float32).at[:B, :Z].set(
        eps.astype(jnp.float32))

    def row_spec(n):                            # per-batch-block tiles
        return pl.BlockSpec((bm, n), lambda i: (i, 0))

    def resident(shape):                        # weights/biases stay VMEM-resident
        return pl.BlockSpec(shape, lambda i: (0, 0))

    recon_flat, mulv = pl.pallas_call(
        _vae_kernel,
        out_shape=(
            jax.ShapeDtypeStruct((B_pad, D), jnp.float32),
            jax.ShapeDtypeStruct((B_pad, 2 * Zp), jnp.float32),
        ),
        grid=grid,
        in_specs=[
            row_spec(D),                                   # x
            row_spec(Zp),                                  # eps
            resident(kparams["w1"].shape), resident(kparams["b1"].shape),
            resident(kparams["w_mulv"].shape), resident(kparams["b_mulv"].shape),
            resident(kparams["w_d1"].shape), resident(kparams["b_d1"].shape),
            resident(kparams["w_d2"].shape), resident(kparams["b_d2"].shape),
        ],
        out_specs=(row_spec(D), row_spec(2 * Zp)),
        compiler_params=pltpu.CompilerParams(
            dimension_semantics=("parallel",)),
    )(
        x_flat, eps_p,
        kparams["w1"], kparams["b1"],
        kparams["w_mulv"], kparams["b_mulv"],
        kparams["w_d1"], kparams["b_d1"],
        kparams["w_d2"], kparams["b_d2"],
    )

    recon = recon_flat[:B].reshape(B, C, H, W)
    mu = mulv[:B, :Z]
    log_var = mulv[:B, Zp:Zp + Z]
    return recon, mu, log_var


def init_params(key, d_in, hidden, latent):
    """Deterministic PyTorch-Linear-style init: U(-1/sqrt(fan_in), 1/sqrt(fan_in)).

    Returns the unfused / unpadded f32 parameters (reference layout).
    """
    def linear(k, fan_in, fan_out):
        kw, kb = jax.random.split(k)
        bound = 1.0 / jnp.sqrt(fan_in)
        w = jax.random.uniform(kw, (fan_in, fan_out), jnp.float32, -bound, bound)
        b = jax.random.uniform(kb, (1, fan_out), jnp.float32, -bound, bound)
        return w, b

    k1, k2, k3, k4, k5 = jax.random.split(key, 5)
    w1, b1 = linear(k1, d_in, hidden)
    w_mu, b_mu = linear(k2, hidden, latent)
    w_lv, b_lv = linear(k3, hidden, latent)
    w_d1, b_d1 = linear(k4, latent, hidden)
    w_d2, b_d2 = linear(k5, hidden, d_in)
    return dict(w1=w1, b1=b1, w_mu=w_mu, b_mu=b_mu, w_lv=w_lv, b_lv=b_lv,
                w_d1=w_d1, b_d1=b_d1, w_d2=w_d2, b_d2=b_d2)


def prepare_kernel_params(p):
    """Fuse mu|log_var weights, zero-pad the latent axis to a multiple of 64
    (so the packed projection is a multiple of 128 lanes wide), and store the
    matmul weights in bf16. Biases stay f32."""
    hidden, latent = p["w_mu"].shape
    zp = _round_up(latent, _LANE // 2)          # 32 -> 64; packed width = 128

    w_mulv = jnp.zeros((hidden, 2 * zp), jnp.float32)
    w_mulv = w_mulv.at[:, :latent].set(p["w_mu"])
    w_mulv = w_mulv.at[:, zp:zp + latent].set(p["w_lv"])
    b_mulv = jnp.zeros((1, 2 * zp), jnp.float32)
    b_mulv = b_mulv.at[:, :latent].set(p["b_mu"])
    b_mulv = b_mulv.at[:, zp:zp + latent].set(p["b_lv"])

    w_d1 = jnp.zeros((zp, p["w_d1"].shape[1]), jnp.float32)
    w_d1 = w_d1.at[:latent].set(p["w_d1"])      # padded latent rows contribute 0

    return dict(
        w1=p["w1"].astype(jnp.bfloat16), b1=p["b1"].astype(jnp.float32),
        w_mulv=w_mulv.astype(jnp.bfloat16), b_mulv=b_mulv.astype(jnp.float32),
        w_d1=w_d1.astype(jnp.bfloat16), b_d1=p["b_d1"].astype(jnp.float32),
        w_d2=p["w_d2"].astype(jnp.bfloat16), b_d2=p["b_d2"].astype(jnp.float32),
    )


if __name__ == "__main__":
    # Small shapes consistent with the module: NCHW image input.
    B, C, H, W = 2, 4, 16, 16
    D = C * H * W          # 1024
    HIDDEN = 128
    LATENT = 32

    root = jax.random.PRNGKey(0)
    k_x, k_eps, k_params = jax.random.split(root, 3)

    x = jax.random.uniform(k_x, (B, C, H, W), jnp.float32)      # image-like input
    eps = jax.random.normal(k_eps, (B, LATENT), jnp.float32)    # reparam noise
    # TODO(synk): eps could be generated in-kernel (pltpu.prng_seed +
    # stateful_normal); kept as an explicit input for deterministic testing.
    params = init_params(k_params, D, HIDDEN, LATENT)
    kparams = prepare_kernel_params(params)

    recon, mu, log_var = vae_forward(x, eps, kparams)
    jax.block_until_ready((recon, mu, log_var))

    assert recon.shape == (B, C, H, W) and recon.dtype == jnp.float32
    assert mu.shape == (B, LATENT) and log_var.shape == (B, LATENT)

    x_flat = x.reshape(B, D)

    # Reference 1: same matmul precision as the kernel (bf16 inputs, f32 acc).
    def mm(a, w):
        return jnp.dot(a.astype(jnp.bfloat16), w.astype(jnp.bfloat16),
                       preferred_element_type=jnp.float32)

    h_ref = jnp.maximum(mm(x_flat, params["w1"]) + params["b1"], 0.0)
    mu_ref = mm(h_ref, params["w_mu"]) + params["b_mu"]
    lv_ref = mm(h_ref, params["w_lv"]) + params["b_lv"]
    z_ref = mu_ref + eps * jnp.exp(0.5 * lv_ref)
    hd_ref = jnp.maximum(mm(z_ref, params["w_d1"]) + params["b_d1"], 0.0)
    recon_ref = jax.nn.sigmoid(
        mm(hd_ref, params["w_d2"]) + params["b_d2"]).reshape(B, C, H, W)

    assert jnp.allclose(mu, mu_ref, atol=5e-3)
    assert jnp.allclose(log_var, lv_ref, atol=5e-3)
    assert jnp.allclose(recon, recon_ref, atol=5e-3)

    # Reference 2: full-f32 math (loose semantic check vs. original module).
    h32 = jnp.maximum(x_flat @ params["w1"] + params["b1"], 0.0)
    mu32 = h32 @ params["w_mu"] + params["b_mu"]
    lv32 = h32 @ params["w_lv"] + params["b_lv"]
    z32 = mu32 + eps * jnp.exp(0.5 * lv32)
    hd32 = jnp.maximum(z32 @ params["w_d1"] + params["b_d1"], 0.0)
    recon32 = jax.nn.sigmoid(hd32 @ params["w_d2"] + params["b_d2"]).reshape(B, C, H, W)
    assert jnp.allclose(mu, mu32, atol=5e-2)
    assert jnp.allclose(log_var, lv32, atol=5e-2)
    assert jnp.allclose(recon, recon32, atol=5e-2)

    print("KERNEL_OK")
</pallas_src>

<mosaic_0001>
module attributes {stable_mosaic.version = 11 : i64} {
  func.func @_vae_kernel(%arg0: i32, %arg1: memref<8x1024xf32, #tpu.memory_space<vmem>>, %arg2: memref<8x64xf32, #tpu.memory_space<vmem>>, %arg3: memref<1024x128xbf16, #tpu.memory_space<vmem>>, %arg4: memref<1x128xf32, #tpu.memory_space<vmem>>, %arg5: memref<128x128xbf16, #tpu.memory_space<vmem>>, %arg6: memref<1x128xf32, #tpu.memory_space<vmem>>, %arg7: memref<64x128xbf16, #tpu.memory_space<vmem>>, %arg8: memref<1x128xf32, #tpu.memory_space<vmem>>, %arg9: memref<128x1024xbf16, #tpu.memory_space<vmem>>, %arg10: memref<1x1024xf32, #tpu.memory_space<vmem>>, %arg11: memref<8x1024xf32, #tpu.memory_space<vmem>>, %arg12: memref<8x128xf32, #tpu.memory_space<vmem>>) attributes {dimension_semantics = [#tpu.dimension_semantics<parallel>], iteration_bounds = array<i64: 1>, scalar_prefetch = 0 : i64, scratch_operands = 0 : i64, tpu.core_type = #tpu.core_type<tc>, window_params = [{transform_indices = @transform_0, window_bounds = array<i64: 8, 1024>}, {transform_indices = @transform_1, window_bounds = array<i64: 8, 64>}, {pipeline_mode = #tpu.pipeline_mode<synchronous>, transform_indices = @transform_2, window_bounds = array<i64: 1024, 128>}, {pipeline_mode = #tpu.pipeline_mode<synchronous>, transform_indices = @transform_3, window_bounds = array<i64: 1, 128>}, {pipeline_mode = #tpu.pipeline_mode<synchronous>, transform_indices = @transform_4, window_bounds = array<i64: 128, 128>}, {pipeline_mode = #tpu.pipeline_mode<synchronous>, transform_indices = @transform_5, window_bounds = array<i64: 1, 128>}, {pipeline_mode = #tpu.pipeline_mode<synchronous>, transform_indices = @transform_6, window_bounds = array<i64: 64, 128>}, {pipeline_mode = #tpu.pipeline_mode<synchronous>, transform_indices = @transform_7, window_bounds = array<i64: 1, 128>}, {pipeline_mode = #tpu.pipeline_mode<synchronous>, transform_indices = @transform_8, window_bounds = array<i64: 128, 1024>}, {pipeline_mode = #tpu.pipeline_mode<synchronous>, transform_indices = @transform_9, window_bounds = array<i64: 1, 1024>}, {transform_indices = @transform_10, window_bounds = array<i64: 8, 1024>}, {transform_indices = @transform_11, window_bounds = array<i64: 8, 128>}]} {
    %c0 = arith.constant 0 : index
    %c0_0 = arith.constant 0 : index
    %0 = vector.load %arg1[%c0, %c0_0] : memref<8x1024xf32, #tpu.memory_space<vmem>>, vector<8x1024xf32>
    %1 = arith.truncf %0 : vector<8x1024xf32> to vector<8x1024xbf16>
    %c0_1 = arith.constant 0 : index
    %c0_2 = arith.constant 0 : index
    %2 = vector.load %arg3[%c0_1, %c0_2] : memref<1024x128xbf16, #tpu.memory_space<vmem>>, vector<1024x128xbf16>
    %cst = arith.constant dense<0.000000e+00> : vector<8x128xf32>
    %3 = tpu.matmul %1, %2, %cst {dimension_numbers = #tpu.dot_dimension_numbers<[1], [0], [0], [1], [0, 0, 1, 1], [], []>} : vector<8x1024xbf16>, vector<1024x128xbf16>, vector<8x128xf32> -> vector<8x128xf32>
    %c0_3 = arith.constant 0 : index
    %c0_4 = arith.constant 0 : index
    %4 = vector.load %arg4[%c0_3, %c0_4] : memref<1x128xf32, #tpu.memory_space<vmem>>, vector<1x128xf32>
    %5 = vector.broadcast %4 : vector<1x128xf32> to vector<8x128xf32>
    %6 = arith.addf %3, %5 : vector<8x128xf32>
    %cst_5 = arith.constant 0.000000e+00 : f32
    %7 = vector.broadcast %cst_5 : f32 to vector<8x128xf32>
    %8 = arith.maximumf %6, %7 : vector<8x128xf32>
    %9 = arith.truncf %8 : vector<8x128xf32> to vector<8x128xbf16>
    %c0_6 = arith.constant 0 : index
    %c0_7 = arith.constant 0 : index
    %10 = vector.load %arg5[%c0_6, %c0_7] : memref<128x128xbf16, #tpu.memory_space<vmem>>, vector<128x128xbf16>
    %cst_8 = arith.constant dense<0.000000e+00> : vector<8x128xf32>
    %11 = tpu.matmul %9, %10, %cst_8 {dimension_numbers = #tpu.dot_dimension_numbers<[1], [0], [0], [1], [0, 0, 1, 1], [], []>} : vector<8x128xbf16>, vector<128x128xbf16>, vector<8x128xf32> -> vector<8x128xf32>
    %c0_9 = arith.constant 0 : index
    %c0_10 = arith.constant 0 : index
    %12 = vector.load %arg6[%c0_9, %c0_10] : memref<1x128xf32, #tpu.memory_space<vmem>>, vector<1x128xf32>
    %13 = vector.broadcast %12 : vector<1x128xf32> to vector<8x128xf32>
    %14 = arith.addf %11, %13 : vector<8x128xf32>
    %c0_11 = arith.constant 0 : index
    %c0_12 = arith.constant 0 : index
    %15 = vector.load %arg12[%c0_11, %c0_12] : memref<8x128xf32, #tpu.memory_space<vmem>>, vector<8x128xf32>
    tpu.vector_store %arg12[%c0_11, %c0_12], %14 {strides = array<i32>} : memref<8x128xf32, #tpu.memory_space<vmem>>, vector<8x128xf32>,
    %16 = vector.extract_strided_slice %14 {offsets = [0, 0], sizes = [8, 64], strides = [1, 1]} : vector<8x128xf32> to vector<8x64xf32>
    %17 = vector.extract_strided_slice %14 {offsets = [0, 64], sizes = [8, 64], strides = [1, 1]} : vector<8x128xf32> to vector<8x64xf32>
    %c0_13 = arith.constant 0 : index
    %c0_14 = arith.constant 0 : index
    %18 = vector.load %arg2[%c0_13, %c0_14] : memref<8x64xf32, #tpu.memory_space<vmem>>, vector<8x64xf32>
    %cst_15 = arith.constant 5.000000e-01 : f32
    %19 = vector.broadcast %cst_15 : f32 to vector<8x64xf32>
    %20 = arith.mulf %19, %17 : vector<8x64xf32>
    %21 = math.exp %20 : vector<8x64xf32>
    %22 = arith.mulf %18, %21 : vector<8x64xf32>
    %23 = arith.addf %16, %22 : vector<8x64xf32>
    %24 = arith.truncf %23 : vector<8x64xf32> to vector<8x64xbf16>
    %c0_16 = arith.constant 0 : index
    %c0_17 = arith.constant 0 : index
    %25 = vector.load %arg7[%c0_16, %c0_17] : memref<64x128xbf16, #tpu.memory_space<vmem>>, vector<64x128xbf16>
    %cst_18 = arith.constant dense<0.000000e+00> : vector<8x128xf32>
    %26 = tpu.matmul %24, %25, %cst_18 {dimension_numbers = #tpu.dot_dimension_numbers<[1], [0], [0], [1], [0, 0, 1, 1], [], []>} : vector<8x64xbf16>, vector<64x128xbf16>, vector<8x128xf32> -> vector<8x128xf32>
    %c0_19 = arith.constant 0 : index
    %c0_20 = arith.constant 0 : index
    %27 = vector.load %arg8[%c0_19, %c0_20] : memref<1x128xf32, #tpu.memory_space<vmem>>, vector<1x128xf32>
    %28 = vector.broadcast %27 : vector<1x128xf32> to vector<8x128xf32>
    %29 = arith.addf %26, %28 : vector<8x128xf32>
    %cst_21 = arith.constant 0.000000e+00 : f32
    %30 = vector.broadcast %cst_21 : f32 to vector<8x128xf32>
    %31 = arith.maximumf %29, %30 : vector<8x128xf32>
    %32 = arith.truncf %31 : vector<8x128xf32> to vector<8x128xbf16>
    %c0_22 = arith.constant 0 : index
    %c0_23 = arith.constant 0 : index
    %33 = vector.load %arg9[%c0_22, %c0_23] : memref<128x1024xbf16, #tpu.memory_space<vmem>>, vector<128x1024xbf16>
    %cst_24 = arith.constant dense<0.000000e+00> : vector<8x1024xf32>
    %34 = tpu.matmul %32, %33, %cst_24 {dimension_numbers = #tpu.dot_dimension_numbers<[1], [0], [0], [1], [0, 0, 1, 1], [], []>} : vector<8x128xbf16>, vector<128x1024xbf16>, vector<8x1024xf32> -> vector<8x1024xf32>
    %c0_25 = arith.constant 0 : index
    %c0_26 = arith.constant 0 : index
    %35 = vector.load %arg10[%c0_25, %c0_26] : memref<1x1024xf32, #tpu.memory_space<vmem>>, vector<1x1024xf32>
    %36 = vector.broadcast %35 : vector<1x1024xf32> to vector<8x1024xf32>
    %37 = arith.addf %34, %36 : vector<8x1024xf32>
    %38 = arith.negf %37 : vector<8x1024xf32>
    %39 = math.exp %38 : vector<8x1024xf32>
    %cst_27 = arith.constant 1.000000e+00 : f32
    %40 = vector.broadcast %cst_27 : f32 to vector<8x1024xf32>
    %41 = arith.addf %40, %39 : vector<8x1024xf32>
    %42 = arith.divf %40, %41 : vector<8x1024xf32>
    %c0_28 = arith.constant 0 : index
    %c0_29 = arith.constant 0 : index
    %43 = vector.load %arg11[%c0_28, %c0_29] : memref<8x1024xf32, #tpu.memory_space<vmem>>, vector<8x1024xf32>
    tpu.vector_store %arg11[%c0_28, %c0_29], %42 {strides = array<i32>} : memref<8x1024xf32, #tpu.memory_space<vmem>>, vector<8x1024xf32>,
    return
  }
  func.func @transform_0(%arg0: i32) -> (i32, i32) {
    %c0_i32 = arith.constant 0 : i32
    %c0_i32_0 = arith.constant 0 : i32
    return %arg0, %c0_i32 : i32, i32
  }
  func.func @transform_1(%arg0: i32) -> (i32, i32) {
    %c0_i32 = arith.constant 0 : i32
    %c0_i32_0 = arith.constant 0 : i32
    return %arg0, %c0_i32 : i32, i32
  }
  func.func @transform_2(%arg0: i32) -> (i32, i32) {
    %c0_i32 = arith.constant 0 : i32
    %c0_i32_0 = arith.constant 0 : i32
    %c0_i32_1 = arith.constant 0 : i32
    return %c0_i32, %c0_i32_0 : i32, i32
  }
  func.func @transform_3(%arg0: i32) -> (i32, i32) {
    %c0_i32 = arith.constant 0 : i32
    %c0_i32_0 = arith.constant 0 : i32
    %c0_i32_1 = arith.constant 0 : i32
    return %c0_i32, %c0_i32_0 : i32, i32
  }
  func.func @transform_4(%arg0: i32) -> (i32, i32) {
    %c0_i32 = arith.constant 0 : i32
    %c0_i32_0 = arith.constant 0 : i32
    %c0_i32_1 = arith.constant 0 : i32
    return %c0_i32, %c0_i32_0 : i32, i32
  }
  func.func @transform_5(%arg0: i32) -> (i32, i32) {
    %c0_i32 = arith.constant 0 : i32
    %c0_i32_0 = arith.constant 0 : i32
    %c0_i32_1 = arith.constant 0 : i32
    return %c0_i32, %c0_i32_0 : i32, i32
  }
  func.func @transform_6(%arg0: i32) -> (i32, i32) {
    %c0_i32 = arith.constant 0 : i32
    %c0_i32_0 = arith.constant 0 : i32
    %c0_i32_1 = arith.constant 0 : i32
    return %c0_i32, %c0_i32_0 : i32, i32
  }
  func.func @transform_7(%arg0: i32) -> (i32, i32) {
    %c0_i32 = arith.constant 0 : i32
    %c0_i32_0 = arith.constant 0 : i32
    %c0_i32_1 = arith.constant 0 : i32
    return %c0_i32, %c0_i32_0 : i32, i32
  }
  func.func @transform_8(%arg0: i32) -> (i32, i32) {
    %c0_i32 = arith.constant 0 : i32
    %c0_i32_0 = arith.constant 0 : i32
    %c0_i32_1 = arith.constant 0 : i32
    return %c0_i32, %c0_i32_0 : i32, i32
  }
  func.func @transform_9(%arg0: i32) -> (i32, i32) {
    %c0_i32 = arith.constant 0 : i32
    %c0_i32_0 = arith.constant 0 : i32
    %c0_i32_1 = arith.constant 0 : i32
    return %c0_i32, %c0_i32_0 : i32, i32
  }
  func.func @transform_10(%arg0: i32) -> (i32, i32) {
    %c0_i32 = arith.constant 0 : i32
    %c0_i32_0 = arith.constant 0 : i32
    return %arg0, %c0_i32 : i32, i32
  }
  func.func @transform_11(%arg0: i32) -> (i32, i32) {
    %c0_i32 = arith.constant 0 : i32
    %c0_i32_0 = arith.constant 0 : i32
    return %arg0, %c0_i32 : i32, i32
  }
}

</mosaic_0001>

<bundles_post_ra>
// kernel: vae_forward.1
= control target key start
LH: loop header
LB: loop body
LE: loop exit
PB: predicated region body
PF: predicated region fallthrough
CT: control target
= control target key end

     0   :  { %17 = vsyncpa [#allocation3], 0  ;;  %s2578_s0 = inlined_call_operand.vmem [shape: f32[8,1024], index: 0, kind: input, shape index: {}]   ;;  %s2579_s1 = inlined_call_operand.vmem [shape: f32[8,64], index: 1, kind: input, shape index: {}]   ;;  %s2580_s2 = inlined_call_operand.hbm [shape: bf16[1024,128], index: 2, kind: input, shape index: {}]   ;;  %s2581_s3 = inlined_call_operand.vmem [shape: f32[1,128], index: 3, kind: input, shape index: {}]   ;;  %s2582_s4 = inlined_call_operand.vmem [shape: bf16[128,128], index: 4, kind: input, shape index: {}]   ;;  %s2583_s5 = inlined_call_operand.vmem [shape: f32[1,128], index: 5, kind: input, shape index: {}]   ;;  %s2584_s6 = inlined_call_operand.vmem [shape: bf16[64,128], index: 6, kind: input, shape index: {}]   ;;  %s2585_s7 = inlined_call_operand.vmem [shape: f32[1,128], index: 7, kind: input, shape index: {}]   ;;  %s2586_s8 = inlined_call_operand.hbm [shape: bf16[128,1024], index: 8, kind: input, shape index: {}]   ;;  %s2587_s9 = inlined_call_operand.vmem [shape: f32[1,1024], index: 9, kind: input, shape index: {}]   ;;  %s2588_s10 = inlined_call_operand.vmem [shape: f32[8,1024], index: 10, kind: output, shape index: {0}]   ;;  %s2589_s11 = inlined_call_operand.vmem [shape: f32[8,128], index: 11, kind: output, shape index: {1}]  }
   0x1   :  { %s27_s19 = sshll.u32 %s2580_s2, 4  ;;  %s28_s19 = int_to_ptr.hbm [resolvable:$true] %s27_s19 }
   0x2   :  { %18 = vsyncpa [#allocation5], 0  ;;  %s2336_s20 = smov [#allocation2]   ;;  %s50_s24 = sshll.u32 %s2586_s8, 4  ;;  %s51_s24 = int_to_ptr.hbm [resolvable:$true] %s50_s24 }
   0x3   :  { %s29_s21 = sshll.u32 %s2336_s20, 4  ;;  %s2337_s25 = smov 64   ;;  %s30_s21 = int_to_ptr.vmem [resolvable:$true] %s29_s21 }
   0x4   :  { %s2338_s26 = smov 4   ;;  %s2339_s27 = smov [#allocation4]  }
   0x5   :  { %35 = dma.hbm_to_vmem [thread:$0]  %s28_s19, 8192, %s30_s21, [#allocation3], %s2337_s25, %s2337_s25, %s2338_s26  }
   0x6   :  { %s52_s28 = sshll.u32 %s2339_s27, 4  ;;  %s2340_s29 = smov 512   ;;  %s53_s28 = int_to_ptr.vmem [resolvable:$true] %s52_s28 }
   0x7   :  { %s2341_s2 = smov 32  }
   0x8   :  { %58 = dma.hbm_to_vmem [thread:$0]  %s51_s24, 8192, %s53_s28, [#allocation5], %s2340_s29, %s2340_s29, %s2341_s2  }
   0x9   :  { %2332 = dma.done.wait [#allocation3], 8192  }
   0xa   :  { %2333 = vsyncadd [#allocation3], 4294959104 }
   0xb   :  { %2334 = dma.done.wait [#allocation5], 8192  }
   0xc   :  { %2335 = vsyncadd [#allocation5], 4294959104  ;;  %v2108_v0 = vld [vmem:[#allocation2 + $0x38] sm:$0xff]  ;;  %v2107_v4 = vld [vmem:[#allocation2 + $0x30] sm:$0xff]  ;;  %vm837_vm0 = vcmask 523264  }
   0xd   :  { %v2116_v1 = vld [vmem:[#allocation2 + $0x78] sm:$0xff]  ;;  %602 = vmatpush.bf16.msra.mxu0 %v2108_v0  ;;  %v2115_v5 = vld [vmem:[#allocation2 + $0x70] sm:$0xff]  ;;  %v2106_v8 = vld [vmem:[#allocation2 + $0x28] sm:$0xff] }
   0xe   :  { %v2124_v2 = vld [vmem:[#allocation2 + $0xb8] sm:$0xff]  ;;  %615 = vmatpush.bf16.msra.mxu1 %v2116_v1  ;;  %v2123_v6 = vld [vmem:[#allocation2 + $0xb0] sm:$0xff]  ;;  %v2114_v9 = vld [vmem:[#allocation2 + $0x68] sm:$0xff] }
   0xf   :  { %v2132_v3 = vld [vmem:[#allocation2 + $0xf8] sm:$0xff]  ;;  %628 = vmatpush.bf16.msra.mxu2 %v2124_v2  ;;  %v2131_v7 = vld [vmem:[#allocation2 + $0xf0] sm:$0xff]  ;;  %v2122_v10 = vld [vmem:[#allocation2 + $0xa8] sm:$0xff] }
  0x10   :  { %641 = vmatpush.bf16.msra.mxu3 %v2132_v3  ;;  %v2130_v11 = vld [vmem:[#allocation2 + $0xe8] sm:$0xff]  ;;  %v2105_v12 = vld [vmem:[#allocation2 + $0x20] sm:$0xff]  ;;  %v2104_v16 = vld [vmem:[#allocation2 + $0x18] sm:$0xff] }
  0x11   :  { %603 = vmatpush.bf16.msra.mxu0 %v2107_v4  ;;  %v2113_v13 = vld [vmem:[#allocation2 + $0x60] sm:$0xff]  ;;  %v2112_v17 = vld [vmem:[#allocation2 + $0x58] sm:$0xff]  ;;  %v2103_v20 = vld [vmem:[#allocation2 + $0x10] sm:$0xff] }
  0x12   :  { %616 = vmatpush.bf16.msra.mxu1 %v2115_v5  ;;  %v2121_v14 = vld [vmem:[#allocation2 + $0xa0] sm:$0xff]  ;;  %v2120_v18 = vld [vmem:[#allocation2 + $0x98] sm:$0xff]  ;;  %v2111_v21 = vld [vmem:[#allocation2 + $0x50] sm:$0xff] }
  0x13   :  { %629 = vmatpush.bf16.msra.mxu2 %v2123_v6  ;;  %v2129_v15 = vld [vmem:[#allocation2 + $0xe0] sm:$0xff]  ;;  %v2128_v19 = vld [vmem:[#allocation2 + $0xd8] sm:$0xff]  ;;  %v2119_v22 = vld [vmem:[#allocation2 + $0x90] sm:$0xff] }
  0x14   :  { %642 = vmatpush.bf16.msra.mxu3 %v2131_v7  ;;  %v2127_v23 = vld [vmem:[#allocation2 + $0xd0] sm:$0xff]  ;;  %v2102_v24 = vld [vmem:[#allocation2 + $0x8] sm:$0xff]  ;;  %v2101_v28 = vld [vmem:[#allocation2] sm:$0xff] }
  0x15   :  { %604 = vmatpush.bf16.msra.mxu0 %v2106_v8  ;;  %v2110_v25 = vld [vmem:[#allocation2 + $0x48] sm:$0xff]  ;;  %v2109_v29 = vld [vmem:[#allocation2 + $0x40] sm:$0xff]  ;;  %v2140_v32 = vld [vmem:[#allocation2 + $0x138] sm:$0xff] }
  0x16   :  { %617 = vmatpush.bf16.msra.mxu1 %v2114_v9  ;;  %v2118_v26 = vld [vmem:[#allocation2 + $0x88] sm:$0xff]  ;;  %v2117_v30 = vld [vmem:[#allocation2 + $0x80] sm:$0xff]  ;;  %v72_v33 = vld [vmem:[%s2578_s0 + $0x10] sm:$0xff] }
  0x17   :  { %630 = vmatpush.bf16.msra.mxu2 %v2122_v10  ;;  %v2126_v27 = vld [vmem:[#allocation2 + $0xc8] sm:$0xff]  ;;  %v2125_v31 = vld [vmem:[#allocation2 + $0xc0] sm:$0xff]  ;;  %v2148_v35 = vld [vmem:[#allocation2 + $0x178] sm:$0xff]  ;;  %v80_v40 = vpack.c.bf16 %v72_v33, %v72_v33 }
  0x18   :  { %643 = vmatpush.bf16.msra.mxu3 %v2130_v11  ;;  %v70_v34 = vld [vmem:[%s2578_s0] sm:$0xff]  ;;  %v73_v36 = vld [vmem:[%s2578_s0 + $0x18] sm:$0xff]  ;;  %v71_v37 = vld [vmem:[%s2578_s0 + $0x8] sm:$0xff] }
  0x19   :  { %605 = vmatpush.bf16.msra.mxu0 %v2105_v12  ;;  %v2156_v38 = vld [vmem:[#allocation2 + $0x1b8] sm:$0xff]  ;;  %v78_v41 = vpack.c.bf16 %v70_v34, %v70_v34  ;;  %v81_v42 = vpack.c.bf16 %v73_v36, %v73_v36  ;;  %v79_v43 = vpack.c.bf16 %v71_v37, %v71_v37  ;;  %v2139_v44 = vld [vmem:[#allocation2 + $0x130] sm:$0xff]  ;;  %v2138_v48 = vld [vmem:[#allocation2 + $0x128] sm:$0xff] }
  0x1a   :  { %618 = vmatpush.bf16.msra.mxu1 %v2113_v13  ;;  %v2164_v39 = vld [vmem:[#allocation2 + $0x1f8] sm:$0xff]  ;;  %v2147_v45 = vld [vmem:[#allocation2 + $0x170] sm:$0xff]  ;;  %v2146_v49 = vld [vmem:[#allocation2 + $0x168] sm:$0xff] }
  0x1b   :  { %631 = vmatpush.bf16.msra.mxu2 %v2121_v14  ;;  %v2155_v46 = vld [vmem:[#allocation2 + $0x1b0] sm:$0xff]  ;;  %v2154_v50 = vld [vmem:[#allocation2 + $0x1a8] sm:$0xff]  ;;  %v2137_v52 = vld [vmem:[#allocation2 + $0x120] sm:$0xff] }
  0x1c   :  { %644 = vmatpush.bf16.msra.mxu3 %v2129_v15  ;;  %v2163_v47 = vld [vmem:[#allocation2 + $0x1f0] sm:$0xff]  ;;  %v2162_v51 = vld [vmem:[#allocation2 + $0x1e8] sm:$0xff]  ;;  %v2145_v53 = vld [vmem:[#allocation2 + $0x160] sm:$0xff] }
  0x1d   :  { %606 = vmatpush.bf16.msra.mxu0 %v2104_v16  ;;  %v2153_v54 = vld [vmem:[#allocation2 + $0x1a0] sm:$0xff]  ;;  %v2136_v56 = vld [vmem:[#allocation2 + $0x118] sm:$0xff]  ;;  %v2135_v60 = vld [vmem:[#allocation2 + $0x110] sm:$0xff] }
  0x1e   :  { %619 = vmatpush.bf16.msra.mxu1 %v2112_v17  ;;  %v2161_v55 = vld [vmem:[#allocation2 + $0x1e0] sm:$0xff]  ;;  %v2144_v57 = vld [vmem:[#allocation2 + $0x158] sm:$0xff]  ;;  %v2143_v61 = vld [vmem:[#allocation2 + $0x150] sm:$0xff] }
  0x1f   :  { %632 = vmatpush.bf16.msra.mxu2 %v2120_v18  ;;  %v2152_v58 = vld [vmem:[#allocation2 + $0x198] sm:$0xff]  ;;  %v2151_v62 = vld [vmem:[#allocation2 + $0x190] sm:$0xff]  ;;  %v2134_v0 = vld [vmem:[#allocation2 + $0x108] sm:$0xff] }
  0x20   :  { %645 = vmatpush.bf16.msra.mxu3 %v2128_v19  ;;  %v2160_v59 = vld [vmem:[#allocation2 + $0x1d8] sm:$0xff]  ;;  %v2159_v63 = vld [vmem:[#allocation2 + $0x1d0] sm:$0xff]  ;;  %v2142_v1 = vld [vmem:[#allocation2 + $0x148] sm:$0xff] }
  0x21   :  { %607 = vmatpush.bf16.msra.mxu0 %v2103_v20  ;;  %v2150_v2 = vld [vmem:[#allocation2 + $0x188] sm:$0xff]  ;;  %v2133_v4 = vld [vmem:[#allocation2 + $0x100] sm:$0xff]  ;;  %v76_v10 = vld [vmem:[%s2578_s0 + $0x30] sm:$0xff] }
  0x22   :  { %620 = vmatpush.bf16.msra.mxu1 %v2111_v21  ;;  %v2158_v3 = vld [vmem:[#allocation2 + $0x1c8] sm:$0xff]  ;;  %v2141_v5 = vld [vmem:[#allocation2 + $0x140] sm:$0xff]  ;;  %v77_v11 = vld [vmem:[%s2578_s0 + $0x38] sm:$0xff]  ;;  %v84_v14 = vpack.c.bf16 %v76_v10, %v76_v10 }
  0x23   :  { %633 = vmatpush.bf16.msra.mxu2 %v2119_v22  ;;  %v2149_v6 = vld [vmem:[#allocation2 + $0x180] sm:$0xff]  ;;  %v75_v8 = vld [vmem:[%s2578_s0 + $0x28] sm:$0xff]  ;;  %v85_v15 = vpack.c.bf16 %v77_v11, %v77_v11  ;;  %v2172_v16 = vld [vmem:[%s2582_s4 + $0x38] sm:$0xff] }
  0x24   :  { %646 = vmatpush.bf16.msra.mxu3 %v2127_v23  ;;  %v74_v7 = vld [vmem:[%s2578_s0 + $0x20] sm:$0xff]  ;;  %v83_v13 = vpack.c.bf16 %v75_v8, %v75_v8  ;;  %v2171_v17 = vld [vmem:[%s2582_s4 + $0x30] sm:$0xff]  ;;  %v2170_v18 = vld [vmem:[%s2582_s4 + $0x28] sm:$0xff] }
  0x25   :  { %608 = vmatpush.bf16.msra.mxu0 %v2102_v24  ;;  %v2157_v9 = vld [vmem:[#allocation2 + $0x1c0] sm:$0xff]  ;;  %v82_v12 = vpack.c.bf16 %v74_v7, %v74_v7  ;;  %v2168_v20 = vld [vmem:[%s2582_s4 + $0x18] sm:$0xff]  ;;  %v2167_v22 = vld [vmem:[%s2582_s4 + $0x10] sm:$0xff] }
  0x26   :  { %621 = vmatpush.bf16.msra.mxu1 %v2110_v25  ;;  %v2169_v19 = vld [vmem:[%s2582_s4 + $0x20] sm:$0xff]  ;;  %v2166_v24 = vld [vmem:[%s2582_s4 + $0x8] sm:$0xff] }
  0x27   :  { %634 = vmatpush.bf16.msra.mxu2 %v2118_v26  ;;  %v2234_v7 = vld [vmem:[#allocation4 + $0x1cc] sm:$0xf]  ;;  %v2229_v11 = vld [vmem:[#allocation4 + $0x19c] sm:$0xf0] }
  0x28   :  { %647 = vmatpush.bf16.msra.mxu3 %v2126_v27  ;;  %v2073_v8 = vld [vmem:[#allocation4 + $0x1e8] sm:$0xf0] }
  0x29   :  { %609 = vmatpush.bf16.msra.mxu0 %v2101_v28  ;;  %v2165_v28 = vld [vmem:[%s2582_s4] sm:$0xff]  ;;  %v2076_v10 = vor.u32 %v2234_v7, %v2073_v8 }
  0x2a   :  { %622 = vmatpush.bf16.msra.mxu1 %v2109_v29  ;;  %v2189_v7 = vld [vmem:[#allocation4 + $0x5c] sm:$0xf0]  ;;  %v2185_v8 = vld [vmem:[#allocation4 + $0x44] sm:$0xf] }
  0x2b   :  { %635 = vmatpush.bf16.msra.mxu2 %v2117_v30  ;;  %v2247_v30 = vld [vmem:[%s2581_s3] ss:$0 sm:$0xff] }
  0x2c   :  { %648 = vmatpush.bf16.msra.mxu3 %v2125_v31  ;;  %610 = vmatmul.bf16.vlgmr.msra.gmra.mxu0 %v78_v41 }
  0x2d   :  { %654 = vmatpush.bf16.msrb.mxu0 %v2140_v32  ;;  %623 = vmatmul.bf16.vlgmr.msra.gmra.mxu1 %v79_v43 }
  0x2e   :  { %667 = vmatpush.bf16.msrb.mxu1 %v2148_v35  ;;  %636 = vmatmul.bf16.vlgmr.msra.gmra.mxu2 %v80_v40 }
  0x2f   :  { %680 = vmatpush.bf16.msrb.mxu2 %v2156_v38  ;;  %649 = vmatmul.bf16.vlgmr.msra.gmra.mxu3 %v81_v42 }
  0x30   :  { %693 = vmatpush.bf16.msrb.mxu3 %v2164_v39 }
  0x31   :  { %655 = vmatpush.bf16.msrb.mxu0 %v2139_v44 }
  0x32   :  { %668 = vmatpush.bf16.msrb.mxu1 %v2147_v45 }
  0x33   :  { %681 = vmatpush.bf16.msrb.mxu2 %v2155_v46 }
  0x34   :  { %694 = vmatpush.bf16.msrb.mxu3 %v2163_v47 }
  0x35   :  { %656 = vmatpush.bf16.msrb.mxu0 %v2138_v48 }
  0x36   :  { %669 = vmatpush.bf16.msrb.mxu1 %v2146_v49 }
  0x37   :  { %682 = vmatpush.bf16.msrb.mxu2 %v2154_v50 }
  0x38   :  { %695 = vmatpush.bf16.msrb.mxu3 %v2162_v51  ;;  %v2176_v51 = vld [vmem:[%s2584_s6 + $0x18] sm:$0xff] }
  0x39   :  { %657 = vmatpush.bf16.msrb.mxu0 %v2137_v52  ;;  %v2175_v52 = vld [vmem:[%s2584_s6 + $0x10] sm:$0xff] }
  0x3a   :  { %670 = vmatpush.bf16.msrb.mxu1 %v2145_v53  ;;  %v2174_v53 = vld [vmem:[%s2584_s6 + $0x8] sm:$0xff] }
  0x3b   :  { %683 = vmatpush.bf16.msrb.mxu2 %v2153_v54  ;;  %v2248_v54 = vld [vmem:[%s2583_s5] ss:$0 sm:$0xff] }
  0x3c   :  { %696 = vmatpush.bf16.msrb.mxu3 %v2161_v55 }
  0x3d   :  { %658 = vmatpush.bf16.msrb.mxu0 %v2136_v56 }
  0x3e   :  { %671 = vmatpush.bf16.msrb.mxu1 %v2144_v57 }
  0x3f   :  { %684 = vmatpush.bf16.msrb.mxu2 %v2152_v58 }
  0x40   :  { %697 = vmatpush.bf16.msrb.mxu3 %v2160_v59 }
  0x41   :  { %659 = vmatpush.bf16.msrb.mxu0 %v2135_v60 }
  0x42   :  { %672 = vmatpush.bf16.msrb.mxu1 %v2143_v61  ;;  %v2173_v61 = vld [vmem:[%s2584_s6] sm:$0xff] }
  0x43   :  { %685 = vmatpush.bf16.msrb.mxu2 %v2151_v62  ;;  %v2063_v62 = vld [vmem:[#allocation4 + $0x1c0] sm:$0xf] }
  0x44   :  { %698 = vmatpush.bf16.msrb.mxu3 %v2159_v63  ;;  %v2237_v63 = vld [vmem:[#allocation4 + $0x1dc] sm:$0xf0] }
  0x45   :  { %660 = vmatpush.bf16.msrb.mxu0 %v2134_v0  ;;  %v2233_v0 = vld [vmem:[#allocation4 + $0x1c4] sm:$0xf] }
  0x46   :  { %673 = vmatpush.bf16.msrb.mxu1 %v2142_v1  ;;  %v2064_v1 = vor.u32 %v2237_v63, %v2063_v62  ;;  %v1905_v62 = vld [vmem:[#allocation4 + $0xa0] sm:$0xf0]  ;;  %v1911_v63 = vld [vmem:[#allocation4 + $0x88] sm:$0xf] }
  0x47   :  { %686 = vmatpush.bf16.msrb.mxu2 %v2150_v2  ;;  %v2065_v2 = vld [vmem:[#allocation4 + $0x1e0] sm:$0xf0] }
  0x48   :  { %699 = vmatpush.bf16.msrb.mxu3 %v2158_v3  ;;  %v2071_v3 = vld [vmem:[#allocation4 + $0x1c8] sm:$0xf] }
  0x49   :  { %661 = vmatpush.bf16.msrb.mxu0 %v2133_v4  ;;  %v2238_v4 = vld [vmem:[#allocation4 + $0x1e4] sm:$0xf0] }
  0x4a   :  { %674 = vmatpush.bf16.msrb.mxu1 %v2141_v5  ;;  %v2068_v5 = vor.u32 %v2233_v0, %v2065_v2  ;;  %v2198_v0 = vld [vmem:[#allocation4 + $0xa4] sm:$0xf0]  ;;  %v1913_v2 = vld [vmem:[#allocation4 + $0xa8] sm:$0xf0] }
  0x4b   :  { %687 = vmatpush.bf16.msrb.mxu2 %v2149_v6  ;;  %v2072_v6 = vor.u32 %v2238_v4, %v2071_v3 }
  0x4c   :  { %700 = vmatpush.bf16.msrb.mxu3 %v2157_v9  ;;  %662 = vmatmul.bf16.vlgmr.msrb.gmra.mxu0 %v82_v12  ;;  %v2031_v9 = vld [vmem:[#allocation4 + $0x180] sm:$0xf]  ;;  %v2225_v12 = vld [vmem:[#allocation4 + $0x184] sm:$0xf] }
  0x4d   :  { %675 = vmatmul.bf16.vlgmr.msrb.gmra.mxu1 %v83_v13  ;;  %776 = vmatpush.bf16.msra.mxu0 %v2172_v16  ;;  %v2033_v13 = vld [vmem:[#allocation4 + $0x1a0] sm:$0xf0]  ;;  %v2039_v16 = vld [vmem:[#allocation4 + $0x188] sm:$0xf] }
  0x4e   :  { %688 = vmatmul.bf16.vlgmr.msrb.gmra.mxu2 %v84_v14  ;;  %845 = vmatpush.bf16.msra.mxu1 %v2176_v51  ;;  %v2032_v14 = vor.u32 %v2229_v11, %v2031_v9  ;;  %v2206_v51 = vld [vmem:[#allocation4 + $0xe4] sm:$0xf0] }
  0x4f   :  { %701 = vmatmul.bf16.vlgmr.msrb.gmra.mxu3 %v85_v15  ;;  %1258 = vmatpush.bf16.msra.mxu2 %v2064_v1  ;;  %v2036_v15 = vor.u32 %v2225_v12, %v2033_v13  ;;  %v2194_v1 = vld [vmem:[#allocation4 + $0x8c] sm:$0xf]  ;;  %v1879_v11 = vld [vmem:[#allocation4 + $0x48] sm:$0xf] }
  0x50   :  { %1271 = vmatpush.bf16.msra.mxu3 %v2068_v5  ;;  %v1912_v5 = vor.u32 %v2198_v0, %v1911_v63  ;;  %v1916_v9 = vor.u32 %v2194_v1, %v1913_v2  ;;  %v2190_v12 = vld [vmem:[#allocation4 + $0x64] sm:$0xf0]  ;;  %v2186_v13 = vld [vmem:[#allocation4 + $0x4c] sm:$0xf]  ;;  %v2017_v0 = vld [vmem:[#allocation4 + $0x170] sm:$0xf0] }
  0x51   :  { %777 = vmatpush.bf16.msra.mxu0 %v2171_v17  ;;  %v2230_v17 = vld [vmem:[#allocation4 + $0x1a4] sm:$0xf0]  ;;  %v2023_v1 = vld [vmem:[#allocation4 + $0x158] sm:$0xf] }
  0x52   :  { %846 = vmatpush.bf16.msra.mxu1 %v2175_v52  ;;  %v2202_v52 = vld [vmem:[#allocation4 + $0xcc] sm:$0xf]  ;;  %v2224_v2 = vld [vmem:[#allocation4 + $0x174] sm:$0xf0] }
  0x53   :  { %1259 = vmatpush.bf16.msra.mxu2 %v2032_v14  ;;  %v1881_v14 = vld [vmem:[#allocation4 + $0x68] sm:$0xf0] }
  0x54   :  { %1272 = vmatpush.bf16.msra.mxu3 %v2036_v15  ;;  %v790_v15 = vld [vmem:[%s2579_s1] sm:$0xff] }
  0x55   :  { %778 = vmatpush.bf16.msra.mxu0 %v2170_v18  ;;  %v2226_v18 = vld [vmem:[#allocation4 + $0x18c] sm:$0xf] }
  0x56   :  { %847 = vmatpush.bf16.msra.mxu1 %v2174_v53  ;;  %v1945_v53 = vld [vmem:[#allocation4 + $0xe8] sm:$0xf0] }
  0x59   :  { %779 = vmatpush.bf16.msra.mxu0 %v2169_v19  ;;  %v2040_v19 = vor.u32 %v2230_v17, %v2039_v16  ;;  %v1839_v17 = vld [vmem:[#allocation4] sm:$0xf] }
  0x5a   :  { %848 = vmatpush.bf16.msra.mxu1 %v2173_v61  ;;  %v1948_v61 = vor.u32 %v2202_v52, %v1945_v53  ;;  %v2232_v52 = vld [vmem:[#allocation4 + $0x1b4] sm:$0xf0]  ;;  %v2228_v53 = vld [vmem:[#allocation4 + $0x19c] sm:$0xf] }
  0x5d   :  { %780 = vmatpush.bf16.msra.mxu0 %v2168_v20  ;;  %v2041_v20 = vld [vmem:[#allocation4 + $0x1a8] sm:$0xf0] }
  0x5e   :  { %1284 = vmatpush.bf16.msrb.mxu1 %v2072_v6  ;;  %v1871_v6 = vld [vmem:[#allocation4 + $0x40] sm:$0xf] }
  0x5f   :  { %v1872_v16 = vor.u32 %v2189_v7, %v1871_v6  ;;  %v2025_v6 = vld [vmem:[#allocation4 + $0x178] sm:$0xf0] }
  0x61   :  { %781 = vmatpush.bf16.msra.mxu0 %v2167_v22  ;;  %v2221_v22 = vld [vmem:[#allocation4 + $0x15c] sm:$0xf0] }
  0x62   :  { %1285 = vmatpush.bf16.msrb.mxu1 %v2040_v19  ;;  %v1880_v19 = vor.u32 %v2190_v12, %v1879_v11  ;;  %v1985_v12 = vld [vmem:[#allocation4 + $0x130] sm:$0xf0] }
  0x65   :  { %782 = vmatpush.bf16.msra.mxu0 %v2166_v24  ;;  %v2217_v24 = vld [vmem:[#allocation4 + $0x144] sm:$0xf] }
  0x69   :  { %783 = vmatpush.bf16.msra.mxu0 %v2165_v28  ;;  %v2222_v28 = vld [vmem:[#allocation4 + $0x164] sm:$0xf0] }
  0x6d   :  { %1297 = vmatpush.bf16.msrb.mxu0 %v2076_v10  ;;  %v1873_v10 = vld [vmem:[#allocation4 + $0x60] sm:$0xf0] }
  0xa9   :  { %v611_v21 = vpop.f32.mrf.mxu0 }
  0xaa   :  { %v624_v23 = vpop.f32.mrf.mxu1  ;;  %v612_v33 = vadd.f32 %v2247_v30, %v611_v21  ;;  %v1999_v21 = vld [vmem:[#allocation4 + $0x140] sm:$0xf]  ;;  %v2009_v30 = vld [vmem:[#allocation4 + $0x168] sm:$0xf0] }
  0xac   :  { %v625_v34 = vadd.f32 %v624_v23, %v612_v33  ;;  %v2044_v23 = vor.u32 %v2226_v18, %v2041_v20  ;;  %v1967_v33 = vld [vmem:[#allocation4 + $0x100] sm:$0xf]  ;;  %v1876_v18 = vor.u32 %v2185_v8, %v1873_v10  ;;  %v1983_v8 = vld [vmem:[#allocation4 + $0x110] sm:$0xf]  ;;  %v2211_v10 = vld [vmem:[#allocation4 + $0x114] sm:$0xf] }
  0xad   :  { %v2181_v20 = vld [vmem:[#allocation4 + $0x1c] sm:$0xf0] }
  0xae   :  { %1298 = vmatpush.bf16.msrb.mxu0 %v2044_v23 }
  0xb1   :  { %v637_v25 = vpop.f32.mrf.mxu2  ;;  %v613_v27 = vpop.f32.mrf.mxu0 }
  0xb2   :  { %v650_v26 = vpop.f32.mrf.mxu3  ;;  %v626_v29 = vpop.f32.mrf.mxu1  ;;  %v638_v35 = vadd.f32 %v637_v25, %v625_v34  ;;  %v2001_v25 = vld [vmem:[#allocation4 + $0x160] sm:$0xf0]  ;;  %v2000_v27 = vor.u32 %v2221_v22, %v1999_v21  ;;  %v2213_v34 = vld [vmem:[#allocation4 + $0x11c] sm:$0xf0] }
  0xb3   :  { %v2218_v29 = vld [vmem:[#allocation4 + $0x14c] sm:$0xf]  ;;  %v2177_v21 = vld [vmem:[#allocation4 + $0x4] sm:$0xf] }
  0xb4   :  { %v651_v36 = vadd.f32 %v650_v26, %v638_v35  ;;  %v2007_v26 = vld [vmem:[#allocation4 + $0x148] sm:$0xf]  ;;  %v2209_v35 = vld [vmem:[#allocation4 + $0x104] sm:$0xf]  ;;  %1260 = vmatpush.bf16.msra.mxu2 %v2000_v27  ;;  %v2178_v27 = vld [vmem:[#allocation4 + $0xc] sm:$0xf] }
  0xb5   :  { %v1841_v22 = vld [vmem:[#allocation4 + $0x20] sm:$0xf0] }
  0xb9   :  { %v639_v31 = vpop.f32.mrf.mxu2 }
  0xba   :  { %v652_v32 = vpop.f32.mrf.mxu3  ;;  %v2004_v31 = vor.u32 %v2217_v24, %v2001_v25  ;;  %v1884_v24 = vor.u32 %v2186_v13, %v1881_v14  ;;  %v1847_v25 = vld [vmem:[#allocation4 + $0x8] sm:$0xf]  ;;  %v1991_v13 = vld [vmem:[#allocation4 + $0x118] sm:$0xf] }
  0xbb   :  { %v2008_v32 = vor.u32 %v2222_v28, %v2007_v26  ;;  %v2182_v26 = vld [vmem:[#allocation4 + $0x24] sm:$0xf0]  ;;  %v2216_v14 = vld [vmem:[#allocation4 + $0x134] sm:$0xf0] }
  0xbc   :  { %1273 = vmatpush.bf16.msra.mxu3 %v2004_v31  ;;  %v2239_v31 = vld [vmem:[#allocation4 + $0x1ec] sm:$0xf0] }
  0xbd   :  { %1286 = vmatpush.bf16.msrb.mxu1 %v2008_v32  ;;  %v1840_v32 = vor.u32 %v2181_v20, %v1839_v17  ;;  %v2212_v17 = vld [vmem:[#allocation4 + $0x11c] sm:$0xf]  ;;  %v1951_v20 = vld [vmem:[#allocation4 + $0xd0] sm:$0xf] }
  0xc9   :  { %v663_v37 = vpop.f32.mrf.mxu0 }
  0xca   :  { %v676_v38 = vpop.f32.mrf.mxu1  ;;  %v664_v39 = vadd.f32 %v663_v37, %v651_v36  ;;  %v2012_v36 = vor.u32 %v2218_v29, %v2009_v30  ;;  %v1969_v37 = vld [vmem:[#allocation4 + $0x120] sm:$0xf0]  ;;  %v1849_v29 = vld [vmem:[#allocation4 + $0x28] sm:$0xf0]  ;;  %v2079_v30 = vld [vmem:[#allocation4 + $0x1d0] sm:$0xf] }
  0xcc   :  { %v677_v40 = vadd.f32 %v676_v38, %v664_v39  ;;  %v1975_v38 = vld [vmem:[#allocation4 + $0x108] sm:$0xf]  ;;  %1299 = vmatpush.bf16.msrb.mxu0 %v2012_v36 }
  0xcd   :  { %v2214_v39 = vld [vmem:[#allocation4 + $0x124] sm:$0xf0] }
  0xd1   :  { %v689_v41 = vpop.f32.mrf.mxu2  ;;  %v665_v44 = vpop.f32.mrf.mxu0 }
  0xd2   :  { %v702_v42 = vpop.f32.mrf.mxu3  ;;  %v690_v43 = vadd.f32 %v689_v41, %v677_v40  ;;  %v678_v45 = vpop.f32.mrf.mxu1  ;;  %v2210_v40 = vld [vmem:[#allocation4 + $0x10c] sm:$0xf]  ;;  %v1976_v44 = vor.u32 %v2214_v39, %v1975_v38  ;;  %v2240_v38 = vld [vmem:[#allocation4 + $0x1f4] sm:$0xf0]  ;;  %v2236_v39 = vld [vmem:[#allocation4 + $0x1dc] sm:$0xf] }
  0xd3   :  { %v1977_v41 = vld [vmem:[#allocation4 + $0x128] sm:$0xf0]  ;;  %v1935_v45 = vld [vmem:[#allocation4 + $0xc0] sm:$0xf] }
  0xd4   :  { %v703_v46 = vadd.f32 %v702_v42, %v690_v43  ;;  %v1968_v42 = vor.u32 %v2213_v34, %v1967_v33  ;;  %v1972_v43 = vor.u32 %v2209_v35, %v1969_v37  ;;  %1287 = vmatpush.bf16.msrb.mxu1 %v1976_v44  ;;  %v2235_v33 = vld [vmem:[#allocation4 + $0x1d4] sm:$0xf]  ;;  %v2087_v35 = vld [vmem:[#allocation4 + $0x1d8] sm:$0xf]  ;;  %v1844_v37 = vor.u32 %v2177_v21, %v1841_v22  ;;  %v2207_v21 = vld [vmem:[#allocation4 + $0xec] sm:$0xf0] }
  0xd5   :  { %v2081_v34 = vld [vmem:[#allocation4 + $0x1f0] sm:$0xf0]  ;;  %v2080_v44 = vor.u32 %v2239_v31, %v2079_v30  ;;  %v1961_v30 = vld [vmem:[#allocation4 + $0xf8] sm:$0xf0]  ;;  %v1919_v31 = vld [vmem:[#allocation4 + $0x90] sm:$0xf] }
  0xd6   :  { %v706_v47 = vmax.f32 %v703_v46, 0.0  ;;  %v2205_v46 = vld [vmem:[#allocation4 + $0xdc] sm:$0xf0]  ;;  %1261 = vmatpush.bf16.msra.mxu2 %v1968_v42  ;;  %1274 = vmatpush.bf16.msra.mxu3 %v1972_v43  ;;  %v1852_v42 = vor.u32 %v2178_v27, %v1849_v29  ;;  %v2203_v22 = vld [vmem:[#allocation4 + $0xd4] sm:$0xf] }
  0xd7   :  { %v2204_v29 = vld [vmem:[#allocation4 + $0xdc] sm:$0xf] }
  0xd8   :  { %v707_v48 = vpack.c.bf16 %v706_v47, %v706_v47  ;;  %v2201_v47 = vld [vmem:[#allocation4 + $0xc4] sm:$0xf] }
  0xd9   :  { %v691_v49 = vpop.f32.mrf.mxu2 }
  0xda   :  { %v704_v50 = vpop.f32.mrf.mxu3  ;;  %784 = vmatmul.bf16.vlgmr.msra.gmra.mxu0 %v707_v48  ;;  %v1980_v48 = vor.u32 %v2210_v40, %v1977_v41  ;;  %v1937_v49 = vld [vmem:[#allocation4 + $0xe0] sm:$0xf0]  ;;  %v2089_v40 = vld [vmem:[#allocation4 + $0x1f8] sm:$0xf0]  ;;  %v1848_v41 = vor.u32 %v2182_v26, %v1847_v25  ;;  %v1959_v25 = vld [vmem:[#allocation4 + $0xd8] sm:$0xf] }
  0xdb   :  { %v1943_v50 = vld [vmem:[#allocation4 + $0xc8] sm:$0xf]  ;;  %v2208_v26 = vld [vmem:[#allocation4 + $0xf4] sm:$0xf0] }
  0xdc   :  { %1300 = vmatpush.bf16.msrb.mxu0 %v1980_v48  ;;  %v2088_v48 = vor.u32 %v2240_v38, %v2087_v35  ;;  %v1921_v35 = vld [vmem:[#allocation4 + $0xb0] sm:$0xf0]  ;;  %v1927_v38 = vld [vmem:[#allocation4 + $0x98] sm:$0xf] }
  0xe0   :  { %1301 = vmatpush.bf16.msrb.mxu0 %v1948_v61  ;;  %v2223_v61 = vld [vmem:[#allocation4 + $0x16c] sm:$0xf0] }
  0xe4   :  { %1302 = vmatpush.bf16.msrb.mxu0 %v1916_v9  ;;  %v2215_v9 = vld [vmem:[#allocation4 + $0x12c] sm:$0xf0] }
  0xe5   :  { %v1984_v11 = vor.u32 %v2215_v9, %v1983_v8 }
  0xe8   :  { %1303 = vmatpush.bf16.msrb.mxu0 %v1884_v24  ;;  %v1953_v24 = vld [vmem:[#allocation4 + $0xf0] sm:$0xf0] }
  0xe9   :  { %v1956_v27 = vor.u32 %v2203_v22, %v1953_v24 }
  0xec   :  { %1304 = vmatpush.bf16.msrb.mxu0 %v1852_v42  ;;  %v1929_v42 = vld [vmem:[#allocation4 + $0xb8] sm:$0xf0] }
 0x157   :  { %v785_v55 = vpop.f32.mrf.mxu0 }
 0x158   :  { %v2473_v56 = vadd.f32 %v2248_v54, %v785_v55  ;;  %v1936_v54 = vor.u32 %v2205_v46, %v1935_v45  ;;  %v1940_v55 = vor.u32 %v2201_v47, %v1937_v49  ;;  %v2084_v45 = vor.u32 %v2235_v33, %v2081_v34  ;;  %v2047_v46 = vld [vmem:[#allocation4 + $0x190] sm:$0xf]  ;;  %v2195_v34 = vld [vmem:[#allocation4 + $0x94] sm:$0xf] }
 0x159   :  { %v2231_v47 = vld [vmem:[#allocation4 + $0x1ac] sm:$0xf0]  ;;  %v2092_v49 = vor.u32 %v2236_v39, %v2089_v40  ;;  %v2200_v39 = vld [vmem:[#allocation4 + $0xb4] sm:$0xf0]  ;;  %v2196_v40 = vld [vmem:[#allocation4 + $0x9c] sm:$0xf] }
 0x15a   :  { %789 = vst [vmem:[%s2589_s11] sm:$0xff] %v2473_v56  ;;  %v791_v57 = vmul.f32 0.5, %v2473_v56  ;;  %1262 = vmatpush.bf16.msra.mxu2 %v1936_v54  ;;  %1275 = vmatpush.bf16.msra.mxu3 %v1940_v55  ;;  %v2057_v54 = vld [vmem:[#allocation4 + $0x1b8] sm:$0xf0]  ;;  %v2048_v55 = vor.u32 %v2231_v47, %v2047_v46  ;;  %v2199_v33 = vld [vmem:[#allocation4 + $0xac] sm:$0xf0] }
 0x15b   :  { %1349 = vmatpush.bf16.msra.mxu0 %v2092_v49  ;;  %v2187_v46 = vld [vmem:[#allocation4 + $0x54] sm:$0xf] }
 0x15c   :  { %v792_v58 = vmul.f32 1.442695, %v791_v57  ;;  %v1944_v57 = vor.u32 %v2206_v51, %v1943_v50  ;;  %v2227_v50 = vld [vmem:[#allocation4 + $0x194] sm:$0xf]  ;;  %v2055_v51 = vld [vmem:[#allocation4 + $0x198] sm:$0xf] }
 0x15d   :  { %v1889_v47 = vld [vmem:[#allocation4 + $0x70] sm:$0xf0] }
 0x15e   :  { %2250 = vpow2.f32 %v792_v58  ;;  %v1903_v58 = vld [vmem:[#allocation4 + $0x80] sm:$0xf]  ;;  %1288 = vmatpush.bf16.msrb.mxu1 %v1944_v57 }
 0x15f   :  { %v787_v59 = vpop.f32.mrf.mxu0 }
 0x160   :  { %v2197_v59 = vld [vmem:[#allocation4 + $0x9c] sm:$0xf0] }
 0x161   :  { %v1904_v3 = vor.u32 %v2197_v59, %v1903_v58  ;;  %v2056_v58 = vor.u32 %v2232_v52, %v2055_v51  ;;  %v2060_v59 = vor.u32 %v2228_v53, %v2057_v54  ;;  %v1897_v51 = vld [vmem:[#allocation4 + $0x78] sm:$0xf0]  ;;  %v1892_v52 = vor.u32 %v2187_v46, %v1889_v47  ;;  %v1855_v54 = vld [vmem:[#allocation4 + $0x10] sm:$0xf] }
 0x162   :  { %1289 = vmatpush.bf16.msrb.mxu1 %v1912_v5  ;;  %v2220_v5 = vld [vmem:[#allocation4 + $0x15c] sm:$0xf] }
 0x163   :  { %1263 = vmatpush.bf16.msra.mxu2 %v1904_v3  ;;  %1350 = vmatpush.bf16.msra.mxu0 %v2060_v59  ;;  %v2028_v7 = vor.u32 %v2220_v5, %v2025_v6  ;;  %v1857_v59 = vld [vmem:[#allocation4 + $0x30] sm:$0xf0] }
 0x164   :  { %v2251_v60 = vpop.eup %2250 }
 0x165   :  { %795 = vrot.lane.b32.xlu0 %v2251_v60, %s2337_s25  ;;  %v2193_v60 = vld [vmem:[#allocation4 + $0x84] sm:$0xf] }
 0x166   :  { %v1908_v4 = vor.u32 %v2193_v60, %v1905_v62  ;;  %1290 = vmatpush.bf16.msrb.mxu1 %v1880_v19  ;;  %v2015_v60 = vld [vmem:[#allocation4 + $0x150] sm:$0xf]  ;;  %v2219_v62 = vld [vmem:[#allocation4 + $0x154] sm:$0xf] }
 0x167   :  { %1264 = vmatpush.bf16.msra.mxu2 %v1872_v16  ;;  %v2016_v63 = vor.u32 %v2223_v61, %v2015_v60  ;;  %v2020_v3 = vor.u32 %v2219_v62, %v2017_v0  ;;  %1351 = vmatpush.bf16.msra.mxu0 %v2028_v7  ;;  %v1992_v16 = vor.u32 %v2216_v14, %v1991_v13  ;;  %v1863_v60 = vld [vmem:[#allocation4 + $0x18] sm:$0xf]  ;;  %v2180_v62 = vld [vmem:[#allocation4 + $0x1c] sm:$0xf] }
 0x168   :  { %1276 = vmatpush.bf16.msra.mxu3 %v1908_v4  ;;  %v2024_v4 = vor.u32 %v2224_v2, %v2023_v1  ;;  %v2184_v61 = vld [vmem:[#allocation4 + $0x34] sm:$0xf0] }
 0x169   :  { %v1864_v2 = vor.u32 %v2184_v61, %v1863_v60 }
 0x16a   :  { %1291 = vmatpush.bf16.msrb.mxu1 %v1848_v41  ;;  %v1928_v41 = vor.u32 %v2200_v39, %v1927_v38 }
 0x16b   :  { %1265 = vmatpush.bf16.msra.mxu2 %v1840_v32  ;;  %v1964_v32 = vor.u32 %v2204_v29, %v1961_v30 }
 0x16c   :  { %1277 = vmatpush.bf16.msra.mxu3 %v1876_v18  ;;  %v1993_v18 = vld [vmem:[#allocation4 + $0x138] sm:$0xf0] }
 0x16d   :  { %v1996_v19 = vor.u32 %v2212_v17, %v1993_v18 }
 0x16f   :  { %1310 = vmatpush.bf16.msrb.mxu2 %v2080_v44  ;;  %1352 = vmatpush.bf16.msra.mxu0 %v1996_v19  ;;  %v2191_v44 = vld [vmem:[#allocation4 + $0x6c] sm:$0xf0] }
 0x170   :  { %1278 = vmatpush.bf16.msra.mxu3 %v1844_v37  ;;  %v1924_v37 = vor.u32 %v2195_v34, %v1921_v35 }
 0x173   :  { %1311 = vmatpush.bf16.msrb.mxu2 %v2048_v55  ;;  %1353 = vmatpush.bf16.msra.mxu0 %v1964_v32  ;;  %v2183_v55 = vld [vmem:[#allocation4 + $0x2c] sm:$0xf0] }
 0x174   :  { %1323 = vmatpush.bf16.msrb.mxu3 %v2084_v45  ;;  %v1932_v45 = vor.u32 %v2196_v40, %v1929_v42  ;;  %v1856_v0 = vor.u32 %v2183_v55, %v1855_v54 }
 0x177   :  { %1312 = vmatpush.bf16.msrb.mxu2 %v2016_v63  ;;  %1354 = vmatpush.bf16.msra.mxu0 %v1932_v45  ;;  %v1865_v63 = vld [vmem:[#allocation4 + $0x38] sm:$0xf0] }
 0x17b   :  { %1313 = vmatpush.bf16.msrb.mxu2 %v1984_v11 }
 0x1d7   :  { %v796_v23 = vpop.permute.xlu0 %795 }
 0x1d8   :  { %v798_v28 = vmul.f32 %v796_v23, %v790_v15  ;;  %v1988_v15 = vor.u32 %v2211_v10, %v1985_v12  ;;  %v1952_v23 = vor.u32 %v2207_v21, %v1951_v20  ;;  %v2494_v10 = vld [vmem:[%s2587_s9] sm:$0xff] }
 0x1d9   :  { %v924_v11 = vperm.slane %v2494_v10, 2  ;;  %v925_v12 = vperm.slane %v2494_v10, 3  ;;  %v922_v17 = vperm.slane %v2494_v10, 0  ;;  %v923_v18 = vperm.slane %v2494_v10, 1 }
 0x1da   :  { %v799_v36 = vadd.f32 %v798_v28, %v2473_v56  ;;  %v2049_v56 = vld [vmem:[#allocation4 + $0x1b0] sm:$0xf0]  ;;  %v1960_v28 = vor.u32 %v2208_v26, %v1959_v25  ;;  %1314 = vmatpush.bf16.msrb.mxu2 %v1952_v23  ;;  %v928_v35 = vperm.slane %v2494_v10, 6  ;;  %v926_v47 = vperm.slane %v2494_v10, 4 }
 0x1db   :  { %v2052_v57 = vor.u32 %v2227_v50, %v2049_v56  ;;  %v2192_v50 = vld [vmem:[#allocation4 + $0x74] sm:$0xf0]  ;;  %v2188_v56 = vld [vmem:[#allocation4 + $0x5c] sm:$0xf] }
 0x1dc   :  { %v800_v43 = vpack.c.bf16 %v799_v36, %v799_v36  ;;  %v1920_v36 = vor.u32 %v2199_v33, %v1919_v31 }
 0x1dd   :  { %1324 = vmatpush.bf16.msrb.mxu3 %v2052_v57  ;;  %v2179_v57 = vld [vmem:[#allocation4 + $0x14] sm:$0xf] }
 0x1de   :  { %1836 = vmatmul.msk.bf16.vlgmr.msra.gmra.mxu1 %vm837_vm0, %v800_v43  ;;  %v1887_v43 = vld [vmem:[#allocation4 + $0x50] sm:$0xf]  ;;  %1315 = vmatpush.bf16.msrb.mxu2 %v1920_v36  ;;  %v1860_v1 = vor.u32 %v2179_v57, %v1857_v59  ;;  %v929_v36 = vperm.slane %v2494_v10, 7 }
 0x1df   :  { %1336 = vmatpush.bf16.msra.mxu1 %v2088_v48  ;;  %v1895_v48 = vld [vmem:[#allocation4 + $0x58] sm:$0xf]  ;;  %v1888_v49 = vor.u32 %v2191_v44, %v1887_v43 }
 0x1e0   :  { %v1896_v53 = vor.u32 %v2192_v50, %v1895_v48 }
 0x1e1   :  { %1325 = vmatpush.bf16.msrb.mxu3 %v2020_v3  ;;  %v1868_v3 = vor.u32 %v2180_v62, %v1865_v63 }
 0x1e2   :  { %1316 = vmatpush.bf16.msrb.mxu2 %v1888_v49 }
 0x1e3   :  { %1337 = vmatpush.bf16.msra.mxu1 %v2056_v58  ;;  %v1900_v58 = vor.u32 %v2188_v56, %v1897_v51  ;;  %v927_v56 = vperm.slane %v2494_v10, 5 }
 0x1e5   :  { %1326 = vmatpush.bf16.msrb.mxu3 %v1988_v15  ;;  %1355 = vmatpush.bf16.msra.mxu0 %v1900_v58 }
 0x1e6   :  { %1317 = vmatpush.bf16.msrb.mxu2 %v1856_v0 }
 0x1e7   :  { %1338 = vmatpush.bf16.msra.mxu1 %v2024_v4  ;;  %v2249_v4 = vld [vmem:[%s2585_s7] ss:$0 sm:$0xff] }
 0x1e9   :  { %1327 = vmatpush.bf16.msrb.mxu3 %v1956_v27  ;;  %1356 = vmatpush.bf16.msra.mxu0 %v1868_v3 }
 0x1eb   :  { %1339 = vmatpush.bf16.msra.mxu1 %v1992_v16 }
 0x1ed   :  { %1328 = vmatpush.bf16.msrb.mxu3 %v1924_v37 }
 0x1ef   :  { %1340 = vmatpush.bf16.msra.mxu1 %v1960_v28 }
 0x1f1   :  { %1329 = vmatpush.bf16.msrb.mxu3 %v1892_v52 }
 0x1f3   :  { %1341 = vmatpush.bf16.msra.mxu1 %v1928_v41 }
 0x1f5   :  { %1330 = vmatpush.bf16.msrb.mxu3 %v1860_v1 }
 0x1f7   :  { %1342 = vmatpush.bf16.msra.mxu1 %v1896_v53 }
 0x1fb   :  { %1343 = vmatpush.bf16.msra.mxu1 %v1864_v2 }
 0x25b   :  { %v850_v5 = vpop.f32.mrf.mxu1 }
 0x25c   :  { %v851_v6 = vadd.f32 %v2249_v4, %v850_v5 }
 0x25e   :  { %v854_v7 = vmax.f32 %v851_v6, 0.0 }
 0x260   :  { %v855_v8 = vpack.c.bf16 %v854_v7, %v854_v7 }
 0x262   :  { %1266 = vmatmul.bf16.vlgmr.msra.gmra.mxu2 %v855_v8  ;;  %1279 = vmatmul.bf16.vlgmr.msra.gmra.mxu3 %v855_v8 }
 0x263   :  { %1292 = vmatmul.bf16.vlgmr.msrb.gmra.mxu1 %v855_v8  ;;  %1305 = vmatmul.bf16.vlgmr.msrb.gmra.mxu0 %v855_v8  ;;  %v852_v9 = vpop.f32.mrf.mxu1 }
 0x272   :  { %1318 = vmatmul.bf16.vlgmr.msrb.gmra.mxu2 %v855_v8  ;;  %1331 = vmatmul.bf16.vlgmr.msrb.gmra.mxu3 %v855_v8 }
 0x273   :  { %1344 = vmatmul.bf16.vlgmr.msra.gmra.mxu1 %v855_v8  ;;  %1357 = vmatmul.bf16.vlgmr.msra.gmra.mxu0 %v855_v8 }
 0x2e0   :  { %v1293_v13 = vpop.f32.mrf.mxu1  ;;  %v1306_v14 = vpop.f32.mrf.mxu0 }
 0x2e1   :  { %v1294_v15 = vadd.f32 %v1293_v13, %v924_v11  ;;  %v1307_v16 = vadd.f32 %v1306_v14, %v925_v12 }
 0x2e3   :  { %v2095_v19 = vmul.f32 -1.442695, %v1294_v15  ;;  %v2096_v20 = vmul.f32 -1.442695, %v1307_v16 }
 0x2e5   :  { %2252 = vpow2.f32 %v2095_v19  ;;  %v1267_v21 = vpop.f32.mrf.mxu2  ;;  %v1280_v22 = vpop.f32.mrf.mxu3 }
 0x2e6   :  { %2254 = vpow2.f32 %v2096_v20  ;;  %v1268_v23 = vadd.f32 %v1267_v21, %v922_v17  ;;  %v1281_v24 = vadd.f32 %v1280_v22, %v923_v18 }
 0x2e8   :  { %v2093_v25 = vmul.f32 -1.442695, %v1268_v23  ;;  %v2094_v26 = vmul.f32 -1.442695, %v1281_v24  ;;  %v1295_v27 = vpop.f32.mrf.mxu1  ;;  %v1308_v28 = vpop.f32.mrf.mxu0 }
 0x2ea   :  { %2256 = vpow2.f32 %v2093_v25 }
 0x2eb   :  { %v2253_v29 = vpop.eup %2252  ;;  %2258 = vpow2.f32 %v2094_v26 }
 0x2ec   :  { %v2255_v30 = vpop.eup %2254  ;;  %v1388_v31 = vadd.f32 1.0, %v2253_v29 }
 0x2ed   :  { %v2500_v32 = vadd.f32 1.0, %v2255_v30  ;;  %v1269_v33 = vpop.f32.mrf.mxu2  ;;  %v1282_v34 = vpop.f32.mrf.mxu3 }
 0x2ee   :  { %2260 = vrcp.f32 %v1388_v31  ;;  %v1433_v42 = vand.u32 2147483647, %v1388_v31  ;;  %v1435_v43 = vand.u32 2147483648, %v1388_v31  ;;  %vm1429_vm1 = vweird.f32 %v1388_v31 }
 0x2ef   :  { %2262 = vrcp.f32 %v2500_v32  ;;  %v1448_v49 = vand.u32 2147483647, %v2500_v32  ;;  %v1450_v50 = vand.u32 2147483648, %v2500_v32  ;;  %vm1444_vm3 = vweird.f32 %v2500_v32 }
 0x2f0   :  { %v2257_v37 = vpop.eup %2256  ;;  %v1345_v38 = vpop.f32.mrf.mxu1  ;;  %vm2515_vm2 = vcmp.eq.f32.partialorder %v1433_v42, 8.507059e+37  ;;  %v1436_v57 = vor.u32 1.1754944e-38, %v1435_v43 }
 0x2f1   :  { %v1358_v39 = vpop.f32.mrf.mxu0  ;;  %v2259_v40 = vpop.eup %2258  ;;  %v2505_v41 = vadd.f32 1.0, %v2257_v37  ;;  %v1346_v45 = vadd.f32 %v1345_v38, %v928_v35  ;;  %vm2521_vm4 = vcmp.eq.f32.partialorder %v1448_v49, 8.507059e+37  ;;  %v1451_v1 = vor.u32 1.1754944e-38, %v1450_v50 }
 0x2f2   :  { %v2507_v44 = vadd.f32 1.0, %v2259_v40  ;;  %v1359_v46 = vadd.f32 %v1358_v39, %v929_v36 }
 0x2f3   :  { %2264 = vrcp.f32 %v2505_v41  ;;  %v2099_v60 = vmul.f32 -1.442695, %v1346_v45  ;;  %v1403_v12 = vand.u32 2147483647, %v2505_v41  ;;  %v1405_v13 = vand.u32 2147483648, %v2505_v41 }
 0x2f4   :  { %v2261_v48 = vpop.eup %2260  ;;  %2266 = vrcp.f32 %v2507_v44  ;;  %v2100_v61 = vmul.f32 -1.442695, %v1359_v46  ;;  %v1420_v20 = vand.u32 2147483648, %v2507_v44  ;;  %v1418_v29 = vand.u32 2147483647, %v2507_v44 }
 0x2f5   :  { %v2263_v51 = vpop.eup %2262  ;;  %v1425_v52 = vmul.f32 %v2261_v48, %v1388_v31  ;;  %v1319_v53 = vpop.f32.mrf.mxu2  ;;  %vm1430_vm5 = vweird.f32 %v2261_v48  ;;  %2268 = vpow2.f32 %v2099_v60  ;;  %vm1399_vm11 = vweird.f32 %v2505_v41 }
 0x2f6   :  { %v1332_v54 = vpop.f32.mrf.mxu3  ;;  %v1440_v58 = vmul.f32 %v2263_v51, %v2500_v32  ;;  %v1320_v62 = vadd.f32 %v1319_v53, %v926_v47  ;;  %vm1445_vm6 = vweird.f32 %v2263_v51  ;;  %2270 = vpow2.f32 %v2100_v61  ;;  %vm1431_vm7 = vmor %vm1429_vm1, %vm1430_vm5 }
 0x2f7   :  { %v1426_v59 = vsub.f32 1.0, %v1425_v52  ;;  %v1333_v2 = vadd.f32 %v1332_v54, %v927_v56  ;;  %vm1446_vm8 = vmor %vm1444_vm3, %vm1445_vm6  ;;  %v1406_v33 = vor.u32 1.1754944e-38, %v1405_v13  ;;  %vm1414_vm13 = vweird.f32 %v2507_v44 }
 0x2f8   :  { %v1441_v63 = vsub.f32 1.0, %v1440_v58  ;;  %v1347_v3 = vpop.f32.mrf.mxu1  ;;  %v2097_v7 = vmul.f32 -1.442695, %v1320_v62  ;;  %vm1404_vm14 = vcmp.eq.f32.partialorder %v1403_v12, 8.507059e+37  ;;  %v1421_v38 = vor.u32 1.1754944e-38, %v1420_v20 }
 0x2f9   :  { %v1360_v4 = vpop.f32.mrf.mxu0  ;;  %v2265_v5 = vpop.eup %2264  ;;  %v1427_v6 = vmul.f32 %v2261_v48, %v1426_v59  ;;  %v2098_v17 = vmul.f32 -1.442695, %v1333_v2  ;;  %vm1419_vm0 = vcmp.eq.f32.partialorder %v1418_v29, 8.507059e+37 }
 0x2fa   :  { %v2267_v8 = vpop.eup %2266  ;;  %v1442_v9 = vmul.f32 %v2263_v51, %v1441_v63  ;;  %v1395_v10 = vmul.f32 %v2265_v5, %v2505_v41  ;;  %2272 = vpow2.f32 %v2097_v7  ;;  %vm1400_vm9 = vweird.f32 %v2265_v5 }
 0x2fb   :  { %v1428_v11 = vadd.f32 %v2261_v48, %v1427_v6  ;;  %v1410_v14 = vmul.f32 %v2267_v8, %v2507_v44  ;;  %2274 = vpow2.f32 %v2098_v17  ;;  %v2269_v26 = vpop.eup %2268  ;;  %vm1415_vm10 = vweird.f32 %v2267_v8  ;;  %vm1401_vm12 = vmor %vm1399_vm11, %vm1400_vm9 }
 0x2fc   :  { %v1443_v15 = vadd.f32 %v2263_v51, %v1442_v9  ;;  %v1396_v16 = vsub.f32 1.0, %v1395_v10  ;;  %v2271_v30 = vpop.eup %2270  ;;  %v1392_v32 = vadd.f32 1.0, %v2269_v26  ;;  %vm1416_vm15 = vmor %vm1414_vm13, %vm1415_vm10 }
 0x2fd   :  { %v1432_v18 = vsel %vm1431_vm7, %v2261_v48, %v1428_v11  ;;  %v1411_v19 = vsub.f32 1.0, %v1410_v14  ;;  %v1321_v21 = vpop.f32.mrf.mxu2  ;;  %v1393_v35 = vadd.f32 1.0, %v2271_v30 }
 0x2fe   :  { %v1334_v22 = vpop.f32.mrf.mxu3  ;;  %v1437_v23 = vsel %vm2515_vm2, %v1436_v57, %v1432_v18  ;;  %v1447_v24 = vsel %vm1446_vm8, %v2263_v51, %v1443_v15  ;;  %v1397_v25 = vmul.f32 %v2265_v5, %v1396_v16  ;;  %2276 = vrcp.f32 %v1392_v32 }
 0x2ff   :  { %1516 = vst [vmem:[%s2588_s10 + $0x10] sm:$0xff] %v1437_v23  ;;  %v1452_v27 = vsel %vm2521_vm4, %v1451_v1, %v1447_v24  ;;  %v1412_v28 = vmul.f32 %v2267_v8, %v1411_v19  ;;  %2278 = vrcp.f32 %v1393_v35  ;;  %v1493_v48 = vand.u32 2147483647, %v1392_v32 }
 0x300   :  { %1517 = vst [vmem:[%s2588_s10 + $0x18] sm:$0xff] %v1452_v27  ;;  %v1398_v31 = vadd.f32 %v2265_v5, %v1397_v25  ;;  %v2273_v36 = vpop.eup %2272  ;;  %v1495_v56 = vand.u32 2147483648, %v1392_v32  ;;  %v1508_v51 = vand.u32 2147483647, %v1393_v35  ;;  %v1510_v53 = vand.u32 2147483648, %v1393_v35 }
 0x301   :  { %v1413_v34 = vadd.f32 %v2267_v8, %v1412_v28  ;;  %v2275_v41 = vpop.eup %2274  ;;  %v1390_v43 = vadd.f32 1.0, %v2273_v36  ;;  %vm1489_vm1 = vweird.f32 %v1392_v32  ;;  %vm2554_vm3 = vcmp.eq.f32.partialorder %v1493_v48, 8.507059e+37 }
 0x302   :  { %v1402_v37 = vsel %vm1401_vm12, %v2265_v5, %v1398_v31  ;;  %v1391_v44 = vadd.f32 1.0, %v2275_v41  ;;  %vm1504_vm4 = vweird.f32 %v1393_v35  ;;  %v1496_v62 = vor.u32 1.1754944e-38, %v1495_v56 }
 0x303   :  { %v1407_v39 = vsel %vm1404_vm14, %v1406_v33, %v1402_v37  ;;  %v1417_v40 = vsel %vm1416_vm15, %v2267_v8, %v1413_v34  ;;  %2280 = vrcp.f32 %v1390_v43  ;;  %vm2558_vm6 = vcmp.eq.f32.partialorder %v1508_v51, 8.507059e+37 }
 0x304   :  { %1514 = vst [vmem:[%s2588_s10] sm:$0xff] %v1407_v39  ;;  %v1422_v42 = vsel %vm1419_vm0, %v1421_v38, %v1417_v40  ;;  %v2277_v45 = vpop.eup %2276  ;;  %2282 = vrcp.f32 %v1391_v44  ;;  %v1511_v2 = vor.u32 1.1754944e-38, %v1510_v53  ;;  %v1463_v4 = vand.u32 2147483647, %v1390_v43 }
 0x305   :  { %1515 = vst [vmem:[%s2588_s10 + $0x8] sm:$0xff] %v1422_v42  ;;  %v2279_v46 = vpop.eup %2278  ;;  %v1485_v47 = vmul.f32 %v2277_v45, %v1392_v32  ;;  %vm1490_vm2 = vweird.f32 %v2277_v45  ;;  %v1465_v6 = vand.u32 2147483648, %v1390_v43  ;;  %v1480_v8 = vand.u32 2147483648, %v1391_v44 }
 0x306   :  { %v1500_v49 = vmul.f32 %v2279_v46, %v1393_v35  ;;  %vm1505_vm5 = vweird.f32 %v2279_v46  ;;  %vm1491_vm7 = vmor %vm1489_vm1, %vm1490_vm2  ;;  %v1478_v14 = vand.u32 2147483647, %v1391_v44  ;;  %vm1459_vm11 = vweird.f32 %v1390_v43 }
 0x307   :  { %v1486_v50 = vsub.f32 1.0, %v1485_v47  ;;  %vm1506_vm8 = vmor %vm1504_vm4, %vm1505_vm5  ;;  %v1466_v16 = vor.u32 1.1754944e-38, %v1465_v6  ;;  %vm1474_vm13 = vweird.f32 %v1391_v44  ;;  %vm1464_vm14 = vcmp.eq.f32.partialorder %v1463_v4, 8.507059e+37 }
 0x308   :  { %v1501_v52 = vsub.f32 1.0, %v1500_v49  ;;  %v1481_v19 = vor.u32 1.1754944e-38, %v1480_v8  ;;  %vm1479_vm0 = vcmp.eq.f32.partialorder %v1478_v14, 8.507059e+37 }
 0x309   :  { %v2281_v54 = vpop.eup %2280  ;;  %v1487_v55 = vmul.f32 %v2277_v45, %v1486_v50 }
 0x30a   :  { %v2283_v58 = vpop.eup %2282  ;;  %v1502_v59 = vmul.f32 %v2279_v46, %v1501_v52  ;;  %v1455_v60 = vmul.f32 %v2281_v54, %v1390_v43  ;;  %vm1460_vm9 = vweird.f32 %v2281_v54 }
 0x30b   :  { %v1488_v61 = vadd.f32 %v2277_v45, %v1487_v55  ;;  %v1470_v0 = vmul.f32 %v2283_v58, %v1391_v44  ;;  %vm1475_vm10 = vweird.f32 %v2283_v58  ;;  %vm1461_vm12 = vmor %vm1459_vm11, %vm1460_vm9 }
 0x30c   :  { %v1503_v1 = vadd.f32 %v2279_v46, %v1502_v59  ;;  %v1456_v3 = vsub.f32 1.0, %v1455_v60  ;;  %vm1476_vm15 = vmor %vm1474_vm13, %vm1475_vm10 }
 0x30d   :  { %v1492_v5 = vsel %vm1491_vm7, %v2277_v45, %v1488_v61  ;;  %v1471_v7 = vsub.f32 1.0, %v1470_v0 }
 0x30e   :  { %v1497_v9 = vsel %vm2554_vm3, %v1496_v62, %v1492_v5  ;;  %v1507_v10 = vsel %vm1506_vm8, %v2279_v46, %v1503_v1  ;;  %v1457_v11 = vmul.f32 %v2281_v54, %v1456_v3 }
 0x30f   :  { %1520 = vst [vmem:[%s2588_s10 + $0x30] sm:$0xff] %v1497_v9  ;;  %v1512_v12 = vsel %vm2558_vm6, %v1511_v2, %v1507_v10  ;;  %v1472_v13 = vmul.f32 %v2283_v58, %v1471_v7 }
 0x310   :  { %1521 = vst [vmem:[%s2588_s10 + $0x38] sm:$0xff] %v1512_v12  ;;  %v1458_v15 = vadd.f32 %v2281_v54, %v1457_v11 }
 0x311   :  { %v1473_v17 = vadd.f32 %v2283_v58, %v1472_v13 }
 0x312   :  { %v1462_v18 = vsel %vm1461_vm12, %v2281_v54, %v1458_v15 }
 0x313   :  { %v1467_v20 = vsel %vm1464_vm14, %v1466_v16, %v1462_v18  ;;  %v1477_v21 = vsel %vm1476_vm15, %v2283_v58, %v1473_v17 }
 0x314   :  { %1518 = vst [vmem:[%s2588_s10 + $0x20] sm:$0xff] %v1467_v20  ;;  %v1482_v22 = vsel %vm1479_vm0, %v1481_v19, %v1477_v21 }
 0x315   :  { %1519 = vst [vmem:[%s2588_s10 + $0x28] sm:$0xff] %v1482_v22 }
 0x316   :  { %1530 = vsyncpa [#allocation3], 1 }
 0x317   :  { %1531 = vsyncpa [#allocation5], 1 }

</bundles_post_ra>
